<compile_context>
chip_gen: v6e
topology: v6e:2x2x1
jax: 0.10.0
libtpu: 0.0.40
codegen_flags: <defaults>
</compile_context>

<pallas_src>
import functools

import jax
import jax.numpy as jnp
from jax.experimental import pallas as pl
from jax.experimental.pallas import tpu as pltpu


# (in_features, out_features) of the four Linear layers for nt_index=1.
DIMS = [(206, 103), (103, 52), (52, 26), (26, 1)]


def _mlp_kernel(x_ref,
                w1_ref, b1_ref,
                w2_ref, b2_ref,
                w3_ref, b3_ref,
                w4_ref, b4_ref,
                o_ref):
    """One batch tile of the 4-layer MLP.

    Matmul operands are in the compute dtype chosen by the wrapper (bf16 by
    default); MXU accumulation, bias add and sigmoid are done in f32.
    """
    cdt = x_ref.dtype
    h = x_ref[...]

    h = jnp.dot(h, w1_ref[...], preferred_element_type=jnp.float32) + b1_ref[...]
    h = jax.nn.sigmoid(h).astype(cdt)

    h = jnp.dot(h, w2_ref[...], preferred_element_type=jnp.float32) + b2_ref[...]
    h = jax.nn.sigmoid(h).astype(cdt)

    h = jnp.dot(h, w3_ref[...], preferred_element_type=jnp.float32) + b3_ref[...]
    h = jax.nn.sigmoid(h).astype(cdt)

    out = jnp.dot(h, w4_ref[...], preferred_element_type=jnp.float32) + b4_ref[...]
    o_ref[...] = out.astype(o_ref.dtype)


def _device_kind() -> str:
    try:
        return jax.devices()[0].device_kind.lower()
    except Exception:
        return ""


def _default_tile_b() -> int:
    kind = _device_kind()
    if "v6" in kind:                               # v6e: 128 MiB VMEM, big tiles
        return 8192
    if "v7" in kind:                               # v7x: only 64 MiB physical VMEM
        return 4096
    if "v5 lite" in kind or "v5e" in kind:         # v5e
        return 2048
    return 2048                                    # conservative default


def _vmem_limit_bytes():
    kind = _device_kind()
    if "v6" in kind or "v5 lite" in kind or "v5e" in kind:
        return 64 * 1024 * 1024                    # 128 MiB physical
    if "v7" in kind:
        return 48 * 1024 * 1024                    # 64 MiB physical
    return None                                    # unknown chip: compiler default


@functools.partial(jax.jit, static_argnames=("tile_b", "compute_dtype"))
def lr_forward(x, params, *, tile_b=None, compute_dtype=jnp.bfloat16):
    """x: [batch, 206]; params: (w1, b1, ..., w4, b4).

    Weights are stored [in, out]; biases are [1, out] (2-D, TPU friendly).
    Returns f32 [batch, 1].
    """
    w1, b1, w2, b2, w3, b3, w4, b4 = params
    batch, feat = x.shape

    if tile_b is None:
        tile_b = _default_tile_b()
    tile_b = min(tile_b, batch)

    # bf16 the big streaming operand (x) and the (tiny) weights; biases stay
    # f32 so the bias-add / sigmoid path is f32.
    x_c = x.astype(compute_dtype)
    w1c, w2c, w3c, w4c = (w.astype(compute_dtype) for w in (w1, w2, w3, w4))

    grid = (pl.cdiv(batch, tile_b),)

    def _resident(a):
        # Same block index every grid step -> fetched once, stays in VMEM.
        return pl.BlockSpec(a.shape, lambda i: (0, 0))

    in_specs = [
        pl.BlockSpec((tile_b, feat), lambda i: (i, 0)),   # x: streamed per tile
        _resident(w1c), _resident(b1),
        _resident(w2c), _resident(b2),
        _resident(w3c), _resident(b3),
        _resident(w4c), _resident(b4),
    ]
    out_specs = pl.BlockSpec((tile_b, 1), lambda i: (i, 0))

    flops = 2 * batch * sum(fi * fo for fi, fo in DIMS)
    transcendentals = batch * sum(fo for _, fo in DIMS[:-1])   # sigmoids
    bytes_accessed = (batch * feat * x_c.dtype.itemsize        # x stream
                      + batch * 4                              # f32 output
                      + sum(a.size * a.dtype.itemsize
                            for a in (w1c, b1, w2c, b2, w3c, b3, w4c, b4)))

    cp_kwargs = dict(dimension_semantics=("parallel",))
    vmem = _vmem_limit_bytes()
    if vmem is not None:
        cp_kwargs["vmem_limit_bytes"] = vmem

    return pl.pallas_call(
        _mlp_kernel,
        out_shape=jax.ShapeDtypeStruct((batch, 1), jnp.float32),
        grid=grid,
        in_specs=in_specs,
        out_specs=out_specs,
        compiler_params=pltpu.CompilerParams(**cp_kwargs),
        cost_estimate=pl.CostEstimate(
            flops=flops,
            transcendentals=transcendentals,
            bytes_accessed=bytes_accessed),
    )(x_c, w1c, b1, w2c, b2, w3c, b3, w4c, b4)


def init_linear(key, fan_in, fan_out):
    """PyTorch-style nn.Linear init: U(-1/sqrt(fan_in), +1/sqrt(fan_in)).
    Weight returned as [in, out] (transposed from torch's [out, in])."""
    kw, kb = jax.random.split(key)
    bound = 1.0 / jnp.sqrt(jnp.float32(fan_in))
    w = jax.random.uniform(kw, (fan_in, fan_out), jnp.float32, -bound, bound)
    b = jax.random.uniform(kb, (1, fan_out), jnp.float32, -bound, bound)
    return w, b


def build_params(key):
    keys = jax.random.split(key, len(DIMS))
    params = []
    for k, (fi, fo) in zip(keys, DIMS):
        w, b = init_linear(k, fi, fo)
        params.extend([w, b])
    return tuple(params)


def reference_forward(x, params):
    """Pure-JAX f32 reference for checking the kernel."""
    w1, b1, w2, b2, w3, b3, w4, b4 = params
    h = jax.nn.sigmoid(x @ w1 + b1)
    h = jax.nn.sigmoid(h @ w2 + b2)
    h = jax.nn.sigmoid(h @ w3 + b3)
    return h @ w4 + b4


if __name__ == "__main__":
    key = jax.random.PRNGKey(0)
    k_params, k_x1, k_x2 = jax.random.split(key, 3)

    params = build_params(k_params)

    # Small single-tile case (batch=8 fits in one block).
    x_small = jax.random.normal(k_x1, (8, 206), jnp.float32)
    out_small = jax.block_until_ready(lr_forward(x_small, params))
    ref_small = reference_forward(x_small, params)
    assert out_small.shape == (8, 1), out_small.shape
    assert jnp.allclose(out_small, ref_small, atol=2e-2, rtol=2e-2), (
        "max abs err:", float(jnp.max(jnp.abs(out_small - ref_small))))

    # Multi-tile case exercising the batch-tiled grid + pipelining.
    x_big = jax.random.normal(k_x2, (256, 206), jnp.float32)
    out_big = jax.block_until_ready(lr_forward(x_big, params, tile_b=64))
    ref_big = reference_forward(x_big, params)
    assert out_big.shape == (256, 1), out_big.shape
    assert jnp.allclose(out_big, ref_big, atol=2e-2, rtol=2e-2), (
        "max abs err:", float(jnp.max(jnp.abs(out_big - ref_big))))

    print("KERNEL_OK")
</pallas_src>

<mosaic_0001>
module attributes {stable_mosaic.version = 11 : i64} {
  func.func @_mlp_kernel(%arg0: i32, %arg1: memref<8x206xbf16, #tpu.memory_space<vmem>>, %arg2: memref<206x103xbf16, #tpu.memory_space<vmem>>, %arg3: memref<1x103xf32, #tpu.memory_space<vmem>>, %arg4: memref<103x52xbf16, #tpu.memory_space<vmem>>, %arg5: memref<1x52xf32, #tpu.memory_space<vmem>>, %arg6: memref<52x26xbf16, #tpu.memory_space<vmem>>, %arg7: memref<1x26xf32, #tpu.memory_space<vmem>>, %arg8: memref<26x1xbf16, #tpu.memory_space<vmem>>, %arg9: memref<1x1xf32, #tpu.memory_space<vmem>>, %arg10: memref<8x1xf32, #tpu.memory_space<vmem>>) attributes {dimension_semantics = [#tpu.dimension_semantics<parallel>], iteration_bounds = array<i64: 1>, scalar_prefetch = 0 : i64, scratch_operands = 0 : i64, tpu.core_type = #tpu.core_type<tc>, window_params = [{transform_indices = @transform_0, window_bounds = array<i64: 8, 206>}, {pipeline_mode = #tpu.pipeline_mode<synchronous>, transform_indices = @transform_1, window_bounds = array<i64: 206, 103>}, {pipeline_mode = #tpu.pipeline_mode<synchronous>, transform_indices = @transform_2, window_bounds = array<i64: 1, 103>}, {pipeline_mode = #tpu.pipeline_mode<synchronous>, transform_indices = @transform_3, window_bounds = array<i64: 103, 52>}, {pipeline_mode = #tpu.pipeline_mode<synchronous>, transform_indices = @transform_4, window_bounds = array<i64: 1, 52>}, {pipeline_mode = #tpu.pipeline_mode<synchronous>, transform_indices = @transform_5, window_bounds = array<i64: 52, 26>}, {pipeline_mode = #tpu.pipeline_mode<synchronous>, transform_indices = @transform_6, window_bounds = array<i64: 1, 26>}, {pipeline_mode = #tpu.pipeline_mode<synchronous>, transform_indices = @transform_7, window_bounds = array<i64: 26, 1>}, {pipeline_mode = #tpu.pipeline_mode<synchronous>, transform_indices = @transform_8, window_bounds = array<i64: 1, 1>}, {transform_indices = @transform_9, window_bounds = array<i64: 8, 1>}]} {
    %c0 = arith.constant 0 : index
    %c0_0 = arith.constant 0 : index
    %0 = vector.load %arg1[%c0, %c0_0] : memref<8x206xbf16, #tpu.memory_space<vmem>>, vector<8x206xbf16>
    %c0_1 = arith.constant 0 : index
    %c0_2 = arith.constant 0 : index
    %1 = vector.load %arg2[%c0_1, %c0_2] : memref<206x103xbf16, #tpu.memory_space<vmem>>, vector<206x103xbf16>
    %cst = arith.constant dense<0.000000e+00> : vector<8x103xf32>
    %2 = tpu.matmul %0, %1, %cst {dimension_numbers = #tpu.dot_dimension_numbers<[1], [0], [0], [1], [0, 0, 1, 1], [], []>} : vector<8x206xbf16>, vector<206x103xbf16>, vector<8x103xf32> -> vector<8x103xf32>
    %c0_3 = arith.constant 0 : index
    %c0_4 = arith.constant 0 : index
    %3 = vector.load %arg3[%c0_3, %c0_4] : memref<1x103xf32, #tpu.memory_space<vmem>>, vector<1x103xf32>
    %4 = vector.broadcast %3 : vector<1x103xf32> to vector<8x103xf32>
    %5 = arith.addf %2, %4 : vector<8x103xf32>
    %6 = arith.negf %5 : vector<8x103xf32>
    %7 = math.exp %6 : vector<8x103xf32>
    %cst_5 = arith.constant 1.000000e+00 : f32
    %8 = vector.broadcast %cst_5 : f32 to vector<8x103xf32>
    %9 = arith.addf %8, %7 : vector<8x103xf32>
    %10 = arith.divf %8, %9 : vector<8x103xf32>
    %11 = arith.truncf %10 : vector<8x103xf32> to vector<8x103xbf16>
    %c0_6 = arith.constant 0 : index
    %c0_7 = arith.constant 0 : index
    %12 = vector.load %arg4[%c0_6, %c0_7] : memref<103x52xbf16, #tpu.memory_space<vmem>>, vector<103x52xbf16>
    %cst_8 = arith.constant dense<0.000000e+00> : vector<8x52xf32>
    %13 = tpu.matmul %11, %12, %cst_8 {dimension_numbers = #tpu.dot_dimension_numbers<[1], [0], [0], [1], [0, 0, 1, 1], [], []>} : vector<8x103xbf16>, vector<103x52xbf16>, vector<8x52xf32> -> vector<8x52xf32>
    %c0_9 = arith.constant 0 : index
    %c0_10 = arith.constant 0 : index
    %14 = vector.load %arg5[%c0_9, %c0_10] : memref<1x52xf32, #tpu.memory_space<vmem>>, vector<1x52xf32>
    %15 = vector.broadcast %14 : vector<1x52xf32> to vector<8x52xf32>
    %16 = arith.addf %13, %15 : vector<8x52xf32>
    %17 = arith.negf %16 : vector<8x52xf32>
    %18 = math.exp %17 : vector<8x52xf32>
    %cst_11 = arith.constant 1.000000e+00 : f32
    %19 = vector.broadcast %cst_11 : f32 to vector<8x52xf32>
    %20 = arith.addf %19, %18 : vector<8x52xf32>
    %21 = arith.divf %19, %20 : vector<8x52xf32>
    %22 = arith.truncf %21 : vector<8x52xf32> to vector<8x52xbf16>
    %c0_12 = arith.constant 0 : index
    %c0_13 = arith.constant 0 : index
    %23 = vector.load %arg6[%c0_12, %c0_13] : memref<52x26xbf16, #tpu.memory_space<vmem>>, vector<52x26xbf16>
    %cst_14 = arith.constant dense<0.000000e+00> : vector<8x26xf32>
    %24 = tpu.matmul %22, %23, %cst_14 {dimension_numbers = #tpu.dot_dimension_numbers<[1], [0], [0], [1], [0, 0, 1, 1], [], []>} : vector<8x52xbf16>, vector<52x26xbf16>, vector<8x26xf32> -> vector<8x26xf32>
    %c0_15 = arith.constant 0 : index
    %c0_16 = arith.constant 0 : index
    %25 = vector.load %arg7[%c0_15, %c0_16] : memref<1x26xf32, #tpu.memory_space<vmem>>, vector<1x26xf32>
    %26 = vector.broadcast %25 : vector<1x26xf32> to vector<8x26xf32>
    %27 = arith.addf %24, %26 : vector<8x26xf32>
    %28 = arith.negf %27 : vector<8x26xf32>
    %29 = math.exp %28 : vector<8x26xf32>
    %cst_17 = arith.constant 1.000000e+00 : f32
    %30 = vector.broadcast %cst_17 : f32 to vector<8x26xf32>
    %31 = arith.addf %30, %29 : vector<8x26xf32>
    %32 = arith.divf %30, %31 : vector<8x26xf32>
    %33 = arith.truncf %32 : vector<8x26xf32> to vector<8x26xbf16>
    %c0_18 = arith.constant 0 : index
    %c0_19 = arith.constant 0 : index
    %34 = vector.load %arg8[%c0_18, %c0_19] : memref<26x1xbf16, #tpu.memory_space<vmem>>, vector<26x1xbf16>
    %cst_20 = arith.constant dense<0.000000e+00> : vector<8x1xf32>
    %35 = tpu.matmul %33, %34, %cst_20 {dimension_numbers = #tpu.dot_dimension_numbers<[1], [0], [0], [1], [0, 0, 1, 1], [], []>} : vector<8x26xbf16>, vector<26x1xbf16>, vector<8x1xf32> -> vector<8x1xf32>
    %c0_21 = arith.constant 0 : index
    %c0_22 = arith.constant 0 : index
    %36 = vector.load %arg9[%c0_21, %c0_22] : memref<1x1xf32, #tpu.memory_space<vmem>>, vector<1x1xf32>
    %37 = vector.broadcast %36 : vector<1x1xf32> to vector<8x1xf32>
    %38 = arith.addf %35, %37 : vector<8x1xf32>
    %c0_23 = arith.constant 0 : index
    %c0_24 = arith.constant 0 : index
    %39 = vector.load %arg10[%c0_23, %c0_24] : memref<8x1xf32, #tpu.memory_space<vmem>>, vector<8x1xf32>
    tpu.vector_store %arg10[%c0_23, %c0_24], %38 {strides = array<i32>} : memref<8x1xf32, #tpu.memory_space<vmem>>, vector<8x1xf32>,
    return
  }
  func.func @transform_0(%arg0: i32) -> (i32, i32) {
    %c0_i32 = arith.constant 0 : i32
    %c0_i32_0 = arith.constant 0 : i32
    return %arg0, %c0_i32 : i32, i32
  }
  func.func @transform_1(%arg0: i32) -> (i32, i32) {
    %c0_i32 = arith.constant 0 : i32
    %c0_i32_0 = arith.constant 0 : i32
    %c0_i32_1 = arith.constant 0 : i32
    return %c0_i32, %c0_i32_0 : i32, i32
  }
  func.func @transform_2(%arg0: i32) -> (i32, i32) {
    %c0_i32 = arith.constant 0 : i32
    %c0_i32_0 = arith.constant 0 : i32
    %c0_i32_1 = arith.constant 0 : i32
    return %c0_i32, %c0_i32_0 : i32, i32
  }
  func.func @transform_3(%arg0: i32) -> (i32, i32) {
    %c0_i32 = arith.constant 0 : i32
    %c0_i32_0 = arith.constant 0 : i32
    %c0_i32_1 = arith.constant 0 : i32
    return %c0_i32, %c0_i32_0 : i32, i32
  }
  func.func @transform_4(%arg0: i32) -> (i32, i32) {
    %c0_i32 = arith.constant 0 : i32
    %c0_i32_0 = arith.constant 0 : i32
    %c0_i32_1 = arith.constant 0 : i32
    return %c0_i32, %c0_i32_0 : i32, i32
  }
  func.func @transform_5(%arg0: i32) -> (i32, i32) {
    %c0_i32 = arith.constant 0 : i32
    %c0_i32_0 = arith.constant 0 : i32
    %c0_i32_1 = arith.constant 0 : i32
    return %c0_i32, %c0_i32_0 : i32, i32
  }
  func.func @transform_6(%arg0: i32) -> (i32, i32) {
    %c0_i32 = arith.constant 0 : i32
    %c0_i32_0 = arith.constant 0 : i32
    %c0_i32_1 = arith.constant 0 : i32
    return %c0_i32, %c0_i32_0 : i32, i32
  }
  func.func @transform_7(%arg0: i32) -> (i32, i32) {
    %c0_i32 = arith.constant 0 : i32
    %c0_i32_0 = arith.constant 0 : i32
    %c0_i32_1 = arith.constant 0 : i32
    return %c0_i32, %c0_i32_0 : i32, i32
  }
  func.func @transform_8(%arg0: i32) -> (i32, i32) {
    %c0_i32 = arith.constant 0 : i32
    %c0_i32_0 = arith.constant 0 : i32
    %c0_i32_1 = arith.constant 0 : i32
    return %c0_i32, %c0_i32_0 : i32, i32
  }
  func.func @transform_9(%arg0: i32) -> (i32, i32) {
    %c0_i32 = arith.constant 0 : i32
    %c0_i32_0 = arith.constant 0 : i32
    return %arg0, %c0_i32 : i32, i32
  }
}

</mosaic_0001>

<bundles_post_ra>
// kernel: lr_forward.1
= control target key start
LH: loop header
LB: loop body
LE: loop exit
PB: predicated region body
PF: predicated region fallthrough
CT: control target
= control target key end

     0   :  { %v627_v0 = vmov 0   ;;  %vm152_vm0 = vcmask 637952   ;;  %vm156_vm1 = vcmask 1046528   ;;  %vm270_vm2 = vcmask 1042432   ;;  %s796_s1 = inlined_call_operand.vmem [shape: bf16[206,103], index: 1, kind: input, shape index: {}]   ;;  %s797_s0 = inlined_call_operand.vmem [shape: bf16[8,206], index: 0, kind: input, shape index: {}]   ;;  %s798_s3 = inlined_call_operand.vmem [shape: bf16[103,52], index: 3, kind: input, shape index: {}]   ;;  %s799_s2 = inlined_call_operand.vmem [shape: f32[1,103], index: 2, kind: input, shape index: {}]   ;;  %s800_s5 = inlined_call_operand.vmem [shape: bf16[52,26], index: 5, kind: input, shape index: {}]   ;;  %s801_s4 = inlined_call_operand.vmem [shape: f32[1,52], index: 4, kind: input, shape index: {}]   ;;  %s802_s7 = inlined_call_operand.vmem [shape: bf16[26,1], index: 7, kind: input, shape index: {}]   ;;  %s803_s8 = inlined_call_operand.<no memory space> [shape: f32[1,1], index: 8, kind: input, shape index: {}]   ;;  %s804_s6 = inlined_call_operand.vmem [shape: f32[1,26], index: 6, kind: input, shape index: {}]   ;;  %s805_s9 = inlined_call_operand.vmem [shape: f32[8,1], index: 9, kind: output, shape index: {}]  }
   0x1   :  { %160 = vmatprep.subr.bf16.mxu0 %v627_v0  ;;  %v587_v1 = vld [vmem:[%s796_s1 + $0x38] sm:$0xff]   ;;  %v588_v2 = vld [vmem:[%s796_s1 + $0x30] sm:$0xff]   ;;  %v589_v3 = vld [vmem:[%s796_s1 + $0x28] sm:$0xff]   ;;  %vm271_vm3 = vcmask 1043456   ;;  %v628_v19 = vmov 65535   ;;  %v629_v23 = vmov 0.0   ;;  %v14_v60 = vstv %s803_s8 }
   0x2   :  { %161 = vmatpush1.bf16.msra.mxu0 %v587_v1  ;;  %v590_v4 = vld [vmem:[%s796_s1 + $0x20] sm:$0xff]   ;;  %v591_v6 = vld [vmem:[%s796_s1 + $0x18] sm:$0xff]   ;;  %v592_v8 = vld [vmem:[%s796_s1 + $0x10] sm:$0xff]   ;;  %v272_v20 = vsel %vm270_vm2, 4294967295, %v628_v19  ;;  %545 = vmatprep.subr.bf16.mxu1 %v629_v23  ;;  %vm630_vm4 = vmmov 0   ;;  %vm266_vm5 = vcmask 842752  }
   0x3   :  { %162 = vmatprep.subr.bf16.mxu0 %v627_v0  ;;  %v35_v5 = vld [vmem:[%s797_s0] sm:$0xff]  ;;  %v593_v9 = vld [vmem:[%s796_s1 + $0x8] sm:$0xff]   ;;  %v596_v13 = vld [vmem:[%s796_s1 + $0x58] sm:$0xff]   ;;  %v273_v21 = vsel %vm271_vm3, %v272_v20, 0  ;;  %559 = vmatprep.mubr.msk.bf16.mxu1 %vm630_vm4, %v629_v23  ;;  %vm363_vm6 = vcmask 1041408   ;;  %vm359_vm7 = vcmask 424960  }
   0x4   :  { %v492_v7 = vcombine.high %v35_v5, %v35_v5  ;;  %v594_v10 = vld [vmem:[%s796_s1] sm:$0xff]   ;;  %v597_v14 = vld [vmem:[%s796_s1 + $0x50] sm:$0xff]   ;;  %v598_v15 = vld [vmem:[%s796_s1 + $0x48] sm:$0xff]   ;;  %v491_v17 = vcombine.low %v35_v5, %v35_v5  ;;  %vm440_vm8 = vcmask 1044480   ;;  %15 = vst [vmem:[#allocation2] sm:$0x1] %v14_v60 }
   0x5   :  { %v595_v11 = vld [vmem:[%s796_s1 + $0x60] sm:$0x7f]   ;;  %v602_v18 = vld [vmem:[%s798_s3 + $0x30] ss:$0 sps:$4 sm:$0xff]   ;;  %v603_v24 = vld [vmem:[%s798_s3 + $0x28] sm:$0xff]   ;;  %vm436_vm9 = vcmask 211968  }
   0x6   :  { %163 = vmatpush1.bf16.msra.mxu0 %v588_v2  ;;  %506 = vmatprep.mubr.msk.bf16.mxu0 %vm152_vm0, %v492_v7  ;;  %v158_v12 = vsel %vm156_vm1, %v595_v11, 0  ;;  %v599_v16 = vld [vmem:[%s796_s1 + $0x40] sm:$0xff]   ;;  %v275_v22 = vand.u32 %v602_v18, %v273_v21  ;;  %v605_v26 = vld [vmem:[%s798_s3 + $0x18] sm:$0xff]   ;;  %v606_v27 = vld [vmem:[%s798_s3 + $0x10] sm:$0xff]   ;;  %vm484_vm10 = vcmask 7168  }
   0x7   :  { %164 = vmatprep.subr.bf16.mxu0 %v627_v0  ;;  %v604_v25 = vld [vmem:[%s798_s3 + $0x20] sm:$0xff]   ;;  %v607_v28 = vld [vmem:[%s798_s3 + $0x8] sm:$0xff]   ;;  %v609_v41 = vld [vmem:[%s800_s5 + $0x18] ss:$0 sps:$4 sm:$0x33]  }
   0x8   :  { %546 = vmatpush3.bf16.msra.mxu1 %v275_v22  ;;  %v608_v29 = vld [vmem:[%s798_s3] sm:$0xff]   ;;  %v365_v42 = vsel %vm363_vm6, %v609_v41, 0  ;;  %v610_v43 = vld [vmem:[%s800_s5 + $0x10] sm:$0xff]   ;;  %v611_v44 = vld [vmem:[%s800_s5 + $0x8] sm:$0xff]  }
   0x9   :  { %547 = vmatprep.subr.bf16.mxu1 %v629_v23  ;;  %v490_v30 = vld [vmem:[%s799_s2] ss:$0 sm:$0xff]  ;;  %v613_v57 = vld [vmem:[%s802_s7 + $0x8] sm:$0x1f]  }
   0xa   :  { %165 = vmatpush1.bf16.msra.mxu0 %v589_v3  ;;  %v612_v45 = vld [vmem:[%s800_s5] sm:$0xff]   ;;  %v442_v58 = vsel %vm440_vm8, %v613_v57, 0 }
   0xb   :  { %166 = vmatprep.subr.bf16.mxu0 %v627_v0  ;;  %v508_v46 = vld [vmem:[%s801_s4] ss:$0 sm:$0xff] }
   0xc   :  { %548 = vmatpush3.bf16.msra.mxu1 %v603_v24  ;;  %v614_v59 = vld [vmem:[%s802_s7] sm:$0xff]  }
   0xd   :  { %549 = vmatprep.subr.bf16.mxu1 %v629_v23  ;;  %v518_v61 = vld [vmem:[%s804_s6] ss:$0 sm:$0xff] }
   0xe   :  { %167 = vmatpush1.bf16.msra.mxu0 %v590_v4 }
   0xf   :  { %168 = vmatprep.subr.bf16.mxu0 %v627_v0 }
  0x10   :  { %550 = vmatpush3.bf16.msra.mxu1 %v604_v25 }
  0x11   :  { %551 = vmatprep.subr.bf16.mxu1 %v629_v23 }
  0x12   :  { %169 = vmatpush1.bf16.msra.mxu0 %v591_v6 }
  0x13   :  { %170 = vmatprep.subr.bf16.mxu0 %v627_v0 }
  0x14   :  { %552 = vmatpush3.bf16.msra.mxu1 %v605_v26 }
  0x15   :  { %553 = vmatprep.subr.bf16.mxu1 %v629_v23 }
  0x16   :  { %171 = vmatpush1.bf16.msra.mxu0 %v592_v8  ;;  %v525_v8 = vld [vmem:[#allocation2] ss:$0 sm:$0xff] }
  0x17   :  { %172 = vmatprep.subr.bf16.mxu0 %v627_v0 }
  0x18   :  { %554 = vmatpush3.bf16.msra.mxu1 %v606_v27 }
  0x19   :  { %555 = vmatprep.subr.bf16.mxu1 %v629_v23 }
  0x1a   :  { %173 = vmatpush1.bf16.msra.mxu0 %v593_v9 }
  0x1b   :  { %174 = vmatprep.subr.bf16.mxu0 %v627_v0 }
  0x1c   :  { %556 = vmatpush3.bf16.msra.mxu1 %v607_v28 }
  0x1d   :  { %557 = vmatprep.subr.bf16.mxu1 %v629_v23 }
  0x1e   :  { %175 = vmatpush1.bf16.msra.mxu0 %v594_v10 }
  0x1f   :  { %182 = vmatprep.subr.bf16.mxu0 %v627_v0 }
  0x20   :  { %558 = vmatpush3.bf16.msra.mxu1 %v608_v29 }
  0x21   :  { %563 = vmatprep.subr.bf16.mxu1 %v629_v23 }
  0x22   :  { %183 = vmatpush2.bf16.msra.mxu0 %v158_v12 }
  0x23   :  { %184 = vmatprep.subr.bf16.mxu0 %v627_v0 }
  0x26   :  { %185 = vmatpush2.bf16.msra.mxu0 %v596_v13 }
  0x27   :  { %186 = vmatprep.subr.bf16.mxu0 %v627_v0 }
  0x2a   :  { %187 = vmatpush2.bf16.msra.mxu0 %v597_v14 }
  0x2b   :  { %188 = vmatprep.subr.bf16.mxu0 %v627_v0 }
  0x2e   :  { %189 = vmatpush2.bf16.msra.mxu0 %v598_v15 }
  0x2f   :  { %190 = vmatprep.subr.bf16.mxu0 %v627_v0 }
  0x32   :  { %191 = vmatpush2.bf16.msra.mxu0 %v599_v16 }
  0x35   :  { %193 = vmatmul.mubr.bf16.vlgmr.msra.gmra.mxu0 %v491_v17 }
  0xf5   :  { %v194_v31 = vpop.f32.mrf.mxu0 }
  0xf6   :  { %v195_v32 = vadd.f32 %v490_v30, %v194_v31 }
  0xf7   :  { %v196_v33 = vpop.f32.mrf.mxu0 }
  0xf8   :  { %v507_v34 = vmul.f32 -1.442695, %v195_v32 }
  0xf9   :  { %v197_v35 = vpop.f32.mrf.mxu0 }
  0xfa   :  { %615 = vpow2.f32 %v507_v34 }
  0xfb   :  { %v198_v36 = vpop.f32.mrf.mxu0 }
 0x107   :  { %v616_v37 = vpop.eup %615 }
 0x108   :  { %v203_v38 = vadd.f32 1.0, %v616_v37 }
 0x10a   :  { %617 = vrcp.f32 %v203_v38 }
 0x117   :  { %v618_v39 = vpop.eup %617 }
 0x118   :  { %v206_v40 = vpack.c.bf16 %v618_v39, %v618_v39 }
 0x11a   :  { %560 = vmatmul.mubr.msk.bf16.vlgmr.msra.gmra.mxu1 %vm266_vm5, %v206_v40 }
 0x11b   :  { %571 = vmatprep.mubr.msk.bf16.mxu1 %vm630_vm4, %v629_v23  ;;  %564 = vmatpush3.bf16.msra.mxu1 %v365_v42 }
 0x11c   :  { %565 = vmatprep.subr.bf16.mxu1 %v629_v23 }
 0x11f   :  { %566 = vmatpush3.bf16.msra.mxu1 %v610_v43 }
 0x120   :  { %567 = vmatprep.subr.bf16.mxu1 %v629_v23 }
 0x123   :  { %568 = vmatpush3.bf16.msra.mxu1 %v611_v44 }
 0x124   :  { %569 = vmatprep.subr.bf16.mxu1 %v629_v23 }
 0x127   :  { %570 = vmatpush3.bf16.msra.mxu1 %v612_v45 }
 0x128   :  { %575 = vmatprep.subr.bf16.mxu1 %v629_v23 }
 0x1da   :  { %v311_v47 = vpop.f32.mrf.mxu1 }
 0x1db   :  { %v312_v48 = vadd.f32 %v508_v46, %v311_v47 }
 0x1dc   :  { %v561_v49 = vpop.f32.mrf.mxu1 }
 0x1dd   :  { %v517_v50 = vmul.f32 -1.442695, %v312_v48 }
 0x1de   :  { %v314_v51 = vpop.f32.mrf.mxu1 }
 0x1df   :  { %619 = vpow2.f32 %v517_v50 }
 0x1e0   :  { %v562_v52 = vpop.f32.mrf.mxu1 }
 0x1ec   :  { %v620_v53 = vpop.eup %619 }
 0x1ed   :  { %v320_v54 = vadd.f32 1.0, %v620_v53 }
 0x1ef   :  { %621 = vrcp.f32 %v320_v54 }
 0x1fc   :  { %v622_v55 = vpop.eup %621 }
 0x1fd   :  { %v323_v56 = vpack.c.bf16 %v622_v55, %v622_v55 }
 0x1ff   :  { %572 = vmatmul.mubr.msk.bf16.vlgmr.msra.gmra.mxu1 %vm359_vm7, %v323_v56 }
 0x200   :  { %579 = vmatprep.mubr.msk.bf16.mxu1 %vm630_vm4, %v629_v23  ;;  %576 = vmatpush3.bf16.msra.mxu1 %v442_v58 }
 0x201   :  { %577 = vmatprep.subr.bf16.mxu1 %v629_v23 }
 0x204   :  { %578 = vmatpush3.bf16.msra.mxu1 %v614_v59 }
 0x2bf   :  { %v401_v62 = vpop.f32.mrf.mxu1 }
 0x2c0   :  { %v402_v63 = vadd.f32 %v518_v61, %v401_v62 }
 0x2c1   :  { %v573_v0 = vpop.f32.mrf.mxu1 }
 0x2c2   :  { %v524_v1 = vmul.f32 -1.442695, %v402_v63 }
 0x2c3   :  { %v404_v2 = vpop.f32.mrf.mxu1 }
 0x2c4   :  { %623 = vpow2.f32 %v524_v1 }
 0x2c5   :  { %v574_v3 = vpop.f32.mrf.mxu1 }
 0x2d1   :  { %v624_v4 = vpop.eup %623 }
 0x2d2   :  { %v410_v5 = vadd.f32 1.0, %v624_v4 }
 0x2d4   :  { %625 = vrcp.f32 %v410_v5 }
 0x2e1   :  { %v626_v6 = vpop.eup %625 }
 0x2e2   :  { %v413_v7 = vpack.c.bf16 %v626_v6, %v626_v6 }
 0x2e4   :  { %580 = vmatmul.mubr.msk.bf16.vlgmr.msra.gmra.mxu1 %vm436_vm9, %v413_v7 }
 0x3a4   :  { %v478_v9 = vpop.f32.mrf.mxu1 }
 0x3a5   :  { %v479_v10 = vadd.f32 %v525_v8, %v478_v9 }
 0x3a6   :  { %v581_v11 = vpop.f32.mrf.mxu1 }
 0x3a7   :  { %485 = vst.msk [vmem:[%s805_s9] sm:$0xff] %vm484_vm10, %v479_v10 }
 0x3a8   :  { %v481_v12 = vpop.f32.mrf.mxu1 }
 0x3aa   :  { %v582_v13 = vpop.f32.mrf.mxu1 }

</bundles_post_ra>
